<compile_context>
chip_gen: v7x
topology: tpu7x:2x2x1
jax: 0.10.0
libtpu: 0.0.40
codegen_flags: <defaults>
</compile_context>

<pallas_src>
import functools

import jax
import jax.numpy as jnp
from jax.experimental import pallas as pl
from jax.experimental.pallas import tpu as pltpu

LANE = 128      # TPU lane width; out_dims is padded up to a multiple of this
SUBLANE = 8     # f32 sublane quantum; batch tiles are multiples of this
MAX_TILE_B = 256


def _linear_kernel(x_ref, wt_ref, b_ref, o_ref):
    # x_ref:  (TILE_B, in_dims)     VMEM  bf16
    # wt_ref: (in_dims, out_pad)    VMEM  bf16  (resident across grid steps)
    # b_ref:  (1, out_pad)          VMEM  f32   (resident across grid steps)
    # o_ref:  (TILE_B, out_pad)     VMEM  f32   (lane-dense: out_pad % 128 == 0)
    acc = jnp.dot(x_ref[...], wt_ref[...], preferred_element_type=jnp.float32)
    o_ref[...] = (acc + b_ref[...]).astype(o_ref.dtype)


def prepare_decoder_params(weight, bias):
    """One-time preprocessing of PyTorch-layout Linear params.

    weight: (out_dims, in_dims)  ->  wt_pad: (in_dims, out_pad) bf16
    bias:   (out_dims,)          ->  b_pad:  (1, out_pad)       f32
    """
    out_dims, in_dims = weight.shape
    out_pad = max(LANE, pl.cdiv(out_dims, LANE) * LANE)
    wt = jnp.zeros((in_dims, out_pad), jnp.bfloat16)
    wt = wt.at[:, :out_dims].set(weight.T.astype(jnp.bfloat16))
    b = jnp.zeros((1, out_pad), jnp.float32)
    b = b.at[0, :out_dims].set(bias.astype(jnp.float32))
    return wt, b, out_dims


@functools.partial(jax.jit, static_argnums=(3,))
def decoder_forward(x, wt_pad, b_pad, out_dims):
    """x: (B, in_dims) f32; wt_pad: (in_dims, out_pad) bf16; b_pad: (1, out_pad) f32."""
    B, in_dims = x.shape
    out_pad = wt_pad.shape[1]

    # Pick a batch tile: multiple of the sublane quantum, capped at MAX_TILE_B.
    tile_b = min(MAX_TILE_B, pl.cdiv(B, SUBLANE) * SUBLANE)
    b_padded = pl.cdiv(B, tile_b) * tile_b
    grid_b = b_padded // tile_b

    x_bf16 = x.astype(jnp.bfloat16)
    if b_padded != B:
        x_bf16 = jnp.pad(x_bf16, ((0, b_padded - B), (0, 0)))

    out = pl.pallas_call(
        _linear_kernel,
        out_shape=jax.ShapeDtypeStruct((b_padded, out_pad), jnp.float32),
        grid_spec=pltpu.PrefetchScalarGridSpec(
            num_scalar_prefetch=0,
            grid=(grid_b,),
            in_specs=[
                pl.BlockSpec((tile_b, in_dims), lambda i: (i, 0)),
                pl.BlockSpec((in_dims, out_pad), lambda i: (0, 0)),  # resident
                pl.BlockSpec((1, out_pad), lambda i: (0, 0)),        # resident
            ],
            out_specs=pl.BlockSpec((tile_b, out_pad), lambda i: (i, 0)),
        ),
        compiler_params=pltpu.CompilerParams(
            dimension_semantics=("parallel",)),
    )(x_bf16, wt_pad, b_pad)

    # Slice padding back off outside the kernel (lane-dense store inside).
    return out[:B, :out_dims]


def init_decoder_params(key, in_dims=256, out_dims=10, dtype=jnp.float32):
    # Deterministic synthetic init mimicking PyTorch nn.Linear default
    # (uniform in [-1/sqrt(in_dims), 1/sqrt(in_dims)]).
    kw, kb = jax.random.split(key)
    bound = 1.0 / (in_dims ** 0.5)
    weight = jax.random.uniform(kw, (out_dims, in_dims), dtype, -bound, bound)
    bias = jax.random.uniform(kb, (out_dims,), dtype, -bound, bound)
    return weight, bias


if __name__ == "__main__":
    key = jax.random.PRNGKey(0)
    kx, kp = jax.random.split(key)

    B, in_dims, out_dims = 8, 256, 10
    x = jax.random.normal(kx, (B, in_dims), jnp.float32)
    weight, bias = init_decoder_params(kp, in_dims, out_dims)

    # One-time param prep (transpose + lane-pad + bf16 cast), not per-call work.
    wt_pad, b_pad, out_dims = prepare_decoder_params(weight, bias)

    y = decoder_forward(x, wt_pad, b_pad, out_dims)
    y = jax.block_until_ready(y)
    assert y.shape == (B, out_dims)

    # Reference 1: same bf16 inputs, f32 accumulation (tight tolerance).
    x_bf = x.astype(jnp.bfloat16)
    y_ref_bf = (jnp.dot(x_bf, wt_pad[:, :out_dims],
                        preferred_element_type=jnp.float32)
                + bias.astype(jnp.float32))
    assert jnp.allclose(y, y_ref_bf, atol=1e-3, rtol=1e-3), "mismatch vs bf16 reference"

    # Reference 2: full f32 PyTorch semantics (loose tolerance from bf16 cast).
    y_ref = x @ weight.T + bias
    assert jnp.allclose(y, y_ref, atol=5e-2, rtol=5e-2), "mismatch vs f32 reference"

    print("KERNEL_OK")
</pallas_src>

<mosaic_0001>
module attributes {stable_mosaic.version = 11 : i64} {
  func.func @_linear_kernel(%arg0: i32, %arg1: memref<8x256xbf16, #tpu.memory_space<vmem>>, %arg2: memref<256x128xbf16, #tpu.memory_space<vmem>>, %arg3: memref<1x128xf32, #tpu.memory_space<vmem>>, %arg4: memref<8x128xf32, #tpu.memory_space<vmem>>) attributes {dimension_semantics = [#tpu.dimension_semantics<parallel>], iteration_bounds = array<i64: 1>, scalar_prefetch = 0 : i64, scratch_operands = 0 : i64, tpu.core_type = #tpu.core_type<tc>, window_params = [{transform_indices = @transform_0, window_bounds = array<i64: 8, 256>}, {pipeline_mode = #tpu.pipeline_mode<synchronous>, transform_indices = @transform_1, window_bounds = array<i64: 256, 128>}, {pipeline_mode = #tpu.pipeline_mode<synchronous>, transform_indices = @transform_2, window_bounds = array<i64: 1, 128>}, {transform_indices = @transform_3, window_bounds = array<i64: 8, 128>}]} {
    %c0 = arith.constant 0 : index
    %c0_0 = arith.constant 0 : index
    %0 = vector.load %arg1[%c0, %c0_0] : memref<8x256xbf16, #tpu.memory_space<vmem>>, vector<8x256xbf16>
    %c0_1 = arith.constant 0 : index
    %c0_2 = arith.constant 0 : index
    %1 = vector.load %arg2[%c0_1, %c0_2] : memref<256x128xbf16, #tpu.memory_space<vmem>>, vector<256x128xbf16>
    %cst = arith.constant dense<0.000000e+00> : vector<8x128xf32>
    %2 = tpu.matmul %0, %1, %cst {dimension_numbers = #tpu.dot_dimension_numbers<[1], [0], [0], [1], [0, 0, 1, 1], [], []>} : vector<8x256xbf16>, vector<256x128xbf16>, vector<8x128xf32> -> vector<8x128xf32>
    %c0_3 = arith.constant 0 : index
    %c0_4 = arith.constant 0 : index
    %3 = vector.load %arg3[%c0_3, %c0_4] : memref<1x128xf32, #tpu.memory_space<vmem>>, vector<1x128xf32>
    %4 = vector.broadcast %3 : vector<1x128xf32> to vector<8x128xf32>
    %5 = arith.addf %2, %4 : vector<8x128xf32>
    %c0_5 = arith.constant 0 : index
    %c0_6 = arith.constant 0 : index
    %6 = vector.load %arg4[%c0_5, %c0_6] : memref<8x128xf32, #tpu.memory_space<vmem>>, vector<8x128xf32>
    tpu.vector_store %arg4[%c0_5, %c0_6], %5 {strides = array<i32>} : memref<8x128xf32, #tpu.memory_space<vmem>>, vector<8x128xf32>,
    return
  }
  func.func @transform_0(%arg0: i32) -> (i32, i32) {
    %c0_i32 = arith.constant 0 : i32
    %c0_i32_0 = arith.constant 0 : i32
    return %arg0, %c0_i32 : i32, i32
  }
  func.func @transform_1(%arg0: i32) -> (i32, i32) {
    %c0_i32 = arith.constant 0 : i32
    %c0_i32_0 = arith.constant 0 : i32
    %c0_i32_1 = arith.constant 0 : i32
    return %c0_i32, %c0_i32_0 : i32, i32
  }
  func.func @transform_2(%arg0: i32) -> (i32, i32) {
    %c0_i32 = arith.constant 0 : i32
    %c0_i32_0 = arith.constant 0 : i32
    %c0_i32_1 = arith.constant 0 : i32
    return %c0_i32, %c0_i32_0 : i32, i32
  }
  func.func @transform_3(%arg0: i32) -> (i32, i32) {
    %c0_i32 = arith.constant 0 : i32
    %c0_i32_0 = arith.constant 0 : i32
    return %arg0, %c0_i32 : i32, i32
  }
}

</mosaic_0001>

<bundles_post_ra>
// kernel: decoder_forward.1
= control target key start
LH: loop header
LB: loop body
LE: loop exit
PB: predicated region body
PF: predicated region fallthrough
CT: control target
= control target key end

     0   :  { %8 = vsyncpa [#allocation3], 0  ;;  %s394_s0 = inlined_call_operand.vmem [shape: bf16[8,256], index: 0, kind: input, shape index: {}]   ;;  %s395_s1 = inlined_call_operand.hbm [shape: bf16[256,128], index: 1, kind: input, shape index: {}]   ;;  %s396_s2 = inlined_call_operand.vmem [shape: f32[1,128], index: 2, kind: input, shape index: {}]   ;;  %s397_s3 = inlined_call_operand.hbm [shape: f32[8,128], index: 3, kind: output, shape index: {}]  }
   0x1   :  { %9 = vsyncpa [#allocation4], 0  ;;  %s340_s12 = smov [#allocation2]   ;;  %s292_s16 = scalar_lea.hbm %s395_s1, 2048 }
   0x2   :  { %s17_s13 = sshll.u32 %s340_s12, 4  ;;  %p293_p0 = scmp.ne.s32.totalorder %s395_s1, %s292_s16  ;;  %s18_s13 = int_to_ptr.vmem [resolvable:$true] %s17_s13 }
   0x3   :  { %p296_p1 = scmp.lt.u32.totalorder %s292_s16, %s395_s1 }
   0x5   :  { %p298_p2 = pnand %p296_p1, %p293_p0 }
   0x7   :  { %301 = shalt.err (!%p298_p2)
}
   0x8   :  { %s302_s21 = scalar_lea.vmem %s18_s13, 2048  ;;  %p307_p4 = scmp.lt.s32.totalorder %s18_s13, %s18_s13 }
   0x9   :  { %p303_p3 = scmp.ne.s32.totalorder %s18_s13, %s302_s21  ;;  %p308_p5 = scmp.lt.s32.totalorder %s302_s21, %s302_s21 }
   0xb   :  { %p309_p6 = por %p308_p5, %p307_p4 }
   0xd   :  { %p310_p7 = pnand %p309_p6, %p303_p3 }
   0xf   :  { %313 = shalt.err (!%p310_p7)
}
  0x10   :  { %s341_s22 = smov 64   ;;  %s342_s23 = smov 4  }
  0x11   :  { %23 = dma.hbm_to_vmem [thread:$0]  %s395_s1, 2048, %s18_s13, [#allocation3], %s341_s22, %s341_s22, %s342_s23  }
  0x12   :  { %336 = dma.done.wait [#allocation3], 2048  }
  0x13   :  { %337 = vsyncadd [#allocation3], 4294965248  ;;  %v274_v0 = vld [vmem:[#allocation2 + $0x40] sm:$0xff]   ;;  %v276_v2 = vld [vmem:[#allocation2 + $0x48] sm:$0xff]  }
  0x14   :  { %v275_v1 = vld [vmem:[#allocation2] sm:$0xff]   ;;  %248 = vmatprep.subr.bf16.mxu0 %v274_v0  ;;  %v277_v3 = vld [vmem:[#allocation2 + $0x8] sm:$0xff]   ;;  %v278_v4 = vld [vmem:[#allocation2 + $0x50] sm:$0xff]  }
  0x15   :  { %249 = vmatpush3.bf16.msra.mxu0 %v275_v1  ;;  %v279_v5 = vld [vmem:[#allocation2 + $0x10] sm:$0xff]   ;;  %v280_v6 = vld [vmem:[#allocation2 + $0x58] sm:$0xff]   ;;  %v282_v8 = vld [vmem:[#allocation2 + $0x60] sm:$0xff]  }
  0x16   :  { %250 = vmatprep.subr.bf16.mxu0 %v276_v2  ;;  %v281_v7 = vld [vmem:[#allocation2 + $0x18] sm:$0xff]   ;;  %v283_v9 = vld [vmem:[#allocation2 + $0x20] sm:$0xff]   ;;  %v284_v10 = vld [vmem:[#allocation2 + $0x68] sm:$0xff]  }
  0x17   :  { %v30_v11 = vld [vmem:[%s394_s0] sm:$0xff]  ;;  %v285_v13 = vld [vmem:[#allocation2 + $0x28] sm:$0xff]   ;;  %v286_v14 = vld [vmem:[#allocation2 + $0x70] sm:$0xff]   ;;  %s343_s0 = smov [#allocation5]  }
  0x18   :  { %v231_v12 = vcombine.high %v30_v11, %v30_v11  ;;  %v287_v15 = vld [vmem:[#allocation2 + $0x30] sm:$0xff]   ;;  %v288_v16 = vld [vmem:[#allocation2 + $0x78] sm:$0xff]   ;;  %v230_v18 = vcombine.low %v30_v11, %v30_v11  ;;  %v229_v20 = vld [vmem:[%s396_s2] ss:$0 sm:$0xff]  ;;  %s220_s29 = sshll.u32 %s343_s0, 4  ;;  %s221_s29 = int_to_ptr.vmem [resolvable:$true] %s220_s29 }
  0x19   :  { %251 = vmatpush3.bf16.msra.mxu0 %v277_v3  ;;  %v289_v17 = vld [vmem:[#allocation2 + $0x38] sm:$0xff]   ;;  %s314_s30 = scalar_lea.vmem %s221_s29, 128  ;;  %p319_p9 = scmp.lt.s32.totalorder %s221_s29, %s221_s29 }
  0x1a   :  { %252 = vmatprep.subr.bf16.mxu0 %v278_v4  ;;  %205 = vmatprep.mubr.bf16.mxu0 %v231_v12  ;;  %p315_p8 = scmp.ne.s32.totalorder %s221_s29, %s314_s30  ;;  %p320_p10 = scmp.lt.s32.totalorder %s314_s30, %s314_s30 }
  0x1c   :  { %p321_p11 = por %p320_p10, %p319_p9 }
  0x1d   :  { %253 = vmatpush3.bf16.msra.mxu0 %v279_v5 }
  0x1e   :  { %254 = vmatprep.subr.bf16.mxu0 %v280_v6  ;;  %p322_p12 = pnand %p321_p11, %p315_p8 }
  0x21   :  { %255 = vmatpush3.bf16.msra.mxu0 %v281_v7 }
  0x22   :  { %256 = vmatprep.subr.bf16.mxu0 %v282_v8 }
  0x25   :  { %257 = vmatpush3.bf16.msra.mxu0 %v283_v9 }
  0x26   :  { %258 = vmatprep.subr.bf16.mxu0 %v284_v10 }
  0x29   :  { %259 = vmatpush3.bf16.msra.mxu0 %v285_v13 }
  0x2a   :  { %260 = vmatprep.subr.bf16.mxu0 %v286_v14 }
  0x2d   :  { %261 = vmatpush3.bf16.msra.mxu0 %v287_v15 }
  0x2e   :  { %262 = vmatprep.subr.bf16.mxu0 %v288_v16 }
  0x31   :  { %263 = vmatpush3.bf16.msra.mxu0 %v289_v17 }
  0x34   :  { %206 = vmatmul.mubr.bf16.vlgmr.msra.gmra.mrb[0].mxu0 %v230_v18 }
 0x107   :  { %v264_v19 = vpop.f32.mrb[0].mxu0 }
 0x108   :  { %v265_v21 = vpop.f32.mrb[1].mxu0 }
 0x109   :  { %v266_v22 = vadd.f32 %v265_v21, %v264_v19  ;;  %v267_v23 = vpop.f32.mrb[2].mxu0 }
 0x10a   :  { %v268_v24 = vpop.f32.mrb[3].mxu0 }
 0x10b   :  { %v208_v25 = vadd.f32 %v266_v22, %v229_v20 }
 0x10d   :  { %213 = vst [vmem:[#allocation5] sm:$0xff] %v208_v25 }
 0x10e   :  { %325 = shalt.err (!%p322_p12)
}
 0x10f   :  { %s326_s2 = scalar_lea.hbm %s397_s3, 128 }
 0x110   :  { %p327_p13 = scmp.ne.s32.totalorder %s397_s3, %s326_s2  ;;  %p330_p0 = scmp.lt.u32.totalorder %s326_s2, %s397_s3 }
 0x112   :  { %p332_p1 = pnand %p330_p0, %p327_p13 }
 0x114   :  { %335 = shalt.err (!%p332_p1)
}
 0x115   :  { %223 = dma.vmem_to_hbm [thread:$0]  %s221_s29, 128, %s397_s3, [#allocation4]  }
 0x116   :  { %338 = dma.done.wait [#allocation4], 128  }
 0x117   :  { %339 = vsyncadd [#allocation4], 4294967168 }
 0x118   :  { %227 = vsyncpa [#allocation3], 1 }
 0x119   :  { %228 = vsyncpa [#allocation4], 1 }

</bundles_post_ra>
